<compile_context>
chip_gen: v7x
topology: tpu7x:2x2x1
jax: 0.10.0
libtpu: 0.0.40
codegen_flags: <defaults>
</compile_context>

<pallas_src>
import jax
import jax.numpy as jnp
from jax import lax
from jax.experimental import pallas as pl
from jax.experimental.pallas import tpu as pltpu

NUM_ODE_STEPS = 64                      # fixed-step RK4 substitute for dopri5
LANE = 128                              # lane width: pad hidden dim to this
ROW_TILE = 256                          # node-dim tile once the graph is large
VMEM_LIMIT_BYTES = 48 * 1024 * 1024     # headroom below 64 MiB physical (v7x)


def _round_up(a, b):
    return (a + b - 1) // b * b


# ------------------------------ Pallas kernel --------------------------------

def _dynamic_se_kernel(x_ref, a_pos_ref, a_neg_ref,
                       w_enc_ref, b_enc_ref,
                       w_pn_ref, b_pn_ref,
                       w_ode_ref, b_ode_ref, t_ref,
                       out_ref, acc):
    k = pl.program_id(1)
    hp = acc.shape[1] // 2              # lane-aligned half width (multiple of 128)

    @pl.when(k == 0)
    def _init():
        acc[...] = jnp.zeros_like(acc)

    # Encoder on the k-th row tile of x: h_k = x_k @ W_enc + b_enc, then one
    # fused [W_pos | W_neg] projection (a single wide MXU matmul).
    h_k = jnp.dot(x_ref[...], w_enc_ref[...],
                  preferred_element_type=jnp.float32) + b_enc_ref[...]
    m = jnp.dot(h_k, w_pn_ref[...], preferred_element_type=jnp.float32)

    # Accumulate A_hat[i, k] @ m into the lane-aligned halves of the resident
    # (tm, 2*hp) accumulator (no masked partial stores).
    acc[:, :hp] += jnp.dot(a_pos_ref[...], m[:, :hp],
                           preferred_element_type=jnp.float32)
    acc[:, hp:] += jnp.dot(a_neg_ref[...], m[:, hp:],
                           preferred_element_type=jnp.float32)

    @pl.when(k == pl.num_programs(1) - 1)
    def _finalize():
        # h0 = [h_pos | h_neg] + [b_pos | b_neg]; stays in VMEM.
        h0 = acc[...] + b_pn_ref[...]

        w_ode = w_ode_ref[...]
        b_ode = jnp.broadcast_to(b_ode_ref[...], h0.shape)   # hoisted broadcast

        t0 = t_ref[0]
        t1 = t_ref[1]
        dt = (t1 - t0) / NUM_ODE_STEPS
        half_dt = 0.5 * dt
        sixth_dt = dt / 6.0

        def f(h):  # ODEFunc: tanh(Linear(h)) — f32 on MXU/VPU/EUP (v5e-safe)
            return jnp.tanh(
                jnp.dot(h, w_ode, preferred_element_type=jnp.float32) + b_ode)

        def rk4_step(_, h):
            k1 = f(h)
            k2 = f(h + half_dt * k1)
            k3 = f(h + half_dt * k2)
            k4 = f(h + dt * k3)
            return h + sixth_dt * (k1 + 2.0 * (k2 + k3) + k4)

        out_ref[...] = lax.fori_loop(0, NUM_ODE_STEPS, rk4_step, h0)


# --------------------------------- wrapper ------------------------------------

def gcn_norm_dense(edge_index, num_nodes, padded_nodes):
    """Dense D^-1/2 (A + I) D^-1/2 with PyG GCNConv conventions (src -> dst)."""
    src = edge_index[0]
    dst = edge_index[1]
    a = jnp.zeros((padded_nodes, padded_nodes), jnp.float32)
    a = a.at[dst, src].add(1.0)                   # A[i, j] = edge j -> i
    self_loop = (jnp.arange(padded_nodes) < num_nodes).astype(jnp.float32)
    a = a + jnp.diag(self_loop)                   # self loops on real nodes only
    deg = a.sum(axis=1)
    dinv = jnp.where(deg > 0, lax.rsqrt(deg), 0.0)
    return dinv[:, None] * a * dinv[None, :]


def _pad2(w, rows, cols):
    out = jnp.zeros((rows, cols), jnp.float32)
    return out.at[:w.shape[0], :w.shape[1]].set(w.astype(jnp.float32))


def efficient_dynamic_se(params, x, pos_edge_index, neg_edge_index, t):
    n, f = x.shape
    h = params["w_enc"].shape[1]
    hp = _round_up(h, LANE)                       # lane-padded hidden per half

    # ----- pad parameters to lane-aligned hidden width (zero padding is inert)
    w_enc_p = _pad2(params["w_enc"], f, hp)
    b_enc_p = _pad2(params["b_enc"].reshape(1, -1), 1, hp)

    # pack [W_pos | W_neg] side-by-side -> one wide projection matmul
    w_pn_p = jnp.zeros((hp, 2 * hp), jnp.float32)
    w_pn_p = w_pn_p.at[:h, :h].set(params["w_pos"].astype(jnp.float32))
    w_pn_p = w_pn_p.at[:h, hp:hp + h].set(params["w_neg"].astype(jnp.float32))
    b_pn_p = jnp.zeros((1, 2 * hp), jnp.float32)
    b_pn_p = b_pn_p.at[:, :h].set(
        params["b_pos"].reshape(1, -1).astype(jnp.float32))
    b_pn_p = b_pn_p.at[:, hp:hp + h].set(
        params["b_neg"].reshape(1, -1).astype(jnp.float32))

    # ODE weight: remap its 4 HxH blocks to the lane-padded [2*hp, 2*hp] layout
    w_ode = params["w_ode"].astype(jnp.float32)
    b_ode = params["b_ode"].reshape(1, -1).astype(jnp.float32)
    w_ode_p = jnp.zeros((2 * hp, 2 * hp), jnp.float32)
    w_ode_p = w_ode_p.at[:h, :h].set(w_ode[:h, :h])
    w_ode_p = w_ode_p.at[:h, hp:hp + h].set(w_ode[:h, h:])
    w_ode_p = w_ode_p.at[hp:hp + h, :h].set(w_ode[h:, :h])
    w_ode_p = w_ode_p.at[hp:hp + h, hp:hp + h].set(w_ode[h:, h:])
    b_ode_p = jnp.zeros((1, 2 * hp), jnp.float32)
    b_ode_p = b_ode_p.at[:, :h].set(b_ode[:, :h])
    b_ode_p = b_ode_p.at[:, hp:hp + h].set(b_ode[:, h:])

    # ----- node padding & tile sizes (sublane multiple of 8 / ROW_TILE blocks)
    if n <= ROW_TILE:
        n_pad = _round_up(n, 8)
        tm = tk = n_pad
    else:
        n_pad = _round_up(n, ROW_TILE)
        tm = tk = ROW_TILE

    x_p = jnp.zeros((n_pad, f), jnp.float32).at[:n, :].set(x.astype(jnp.float32))
    a_pos = gcn_norm_dense(pos_edge_index, n, n_pad)
    a_neg = gcn_norm_dense(neg_edge_index, n, n_pad)

    grid = (n_pad // tm, n_pad // tk)
    const = lambda i, k: (0, 0)

    out = pl.pallas_call(
        _dynamic_se_kernel,
        out_shape=jax.ShapeDtypeStruct((n_pad, 2 * hp), jnp.float32),
        grid=grid,
        in_specs=[
            pl.BlockSpec((tk, f), lambda i, k: (k, 0)),          # x row tile k
            pl.BlockSpec((tm, tk), lambda i, k: (i, k)),         # A_pos tile
            pl.BlockSpec((tm, tk), lambda i, k: (i, k)),         # A_neg tile
            pl.BlockSpec((f, hp), const),                        # W_enc
            pl.BlockSpec((1, hp), const),                        # b_enc
            pl.BlockSpec((hp, 2 * hp), const),                   # [W_pos|W_neg]
            pl.BlockSpec((1, 2 * hp), const),                    # [b_pos|b_neg]
            pl.BlockSpec((2 * hp, 2 * hp), const),               # W_ode
            pl.BlockSpec((1, 2 * hp), const),                    # b_ode
            pl.BlockSpec(memory_space=pltpu.MemorySpace.SMEM),   # t scalars
        ],
        out_specs=pl.BlockSpec((tm, 2 * hp), lambda i, k: (i, 0)),
        scratch_shapes=[
            pltpu.VMEM((tm, 2 * hp), jnp.float32),  # [acc_pos|acc_neg], k-resident
        ],
        compiler_params=pltpu.CompilerParams(
            dimension_semantics=("parallel", "arbitrary"),
            vmem_limit_bytes=VMEM_LIMIT_BYTES,
        ),
    )(x_p, a_pos, a_neg,
      w_enc_p, b_enc_p, w_pn_p, b_pn_p,
      w_ode_p, b_ode_p, t.astype(jnp.float32))

    # strip node + lane padding; glue the pos/neg halves back into [N, 2H]
    return jnp.concatenate([out[:n, :h], out[:n, hp:hp + h]], axis=1)


# ----------------------------------- main -------------------------------------

def _init_linear(key, fan_in, w_shape, b_shape):
    bound = 1.0 / jnp.sqrt(jnp.float32(fan_in))
    kw, kb = jax.random.split(key)
    w = jax.random.uniform(kw, w_shape, jnp.float32, -bound, bound)
    b = jax.random.uniform(kb, b_shape, jnp.float32, -bound, bound)
    return w, b


if __name__ == "__main__":
    N, NUM_FEATURES, HIDDEN = 8, 16, 32   # small synthetic graph

    key = jax.random.PRNGKey(0)
    keys = jax.random.split(key, 6)

    x = jax.random.normal(keys[0], (N, NUM_FEATURES), jnp.float32)

    # deterministic synthetic directed edge lists (no self loops)
    pos_edge_index = jnp.array([[0, 1, 2, 3, 4, 5, 6, 7, 1, 3],
                                [1, 2, 3, 4, 5, 6, 7, 0, 4, 6]], dtype=jnp.int32)
    neg_edge_index = jnp.array([[0, 2, 4, 6, 1, 5],
                                [3, 5, 7, 1, 6, 0]], dtype=jnp.int32)
    t = jnp.array([0.0, 1.0], jnp.float32)

    w_enc, b_enc = _init_linear(keys[1], NUM_FEATURES,
                                (NUM_FEATURES, HIDDEN), (1, HIDDEN))
    w_pos, b_pos = _init_linear(keys[2], HIDDEN, (HIDDEN, HIDDEN), (1, HIDDEN))
    w_neg, b_neg = _init_linear(keys[3], HIDDEN, (HIDDEN, HIDDEN), (1, HIDDEN))
    w_ode, b_ode = _init_linear(keys[4], 2 * HIDDEN,
                                (2 * HIDDEN, 2 * HIDDEN), (1, 2 * HIDDEN))

    params = dict(w_enc=w_enc, b_enc=b_enc,
                  w_pos=w_pos, b_pos=b_pos,
                  w_neg=w_neg, b_neg=b_neg,
                  w_ode=w_ode, b_ode=b_ode)

    out = efficient_dynamic_se(params, x, pos_edge_index, neg_edge_index, t)
    out = jax.block_until_ready(out)
    assert out.shape == (N, 2 * HIDDEN)
    assert bool(jnp.all(jnp.isfinite(out)))
    print("KERNEL_OK")
</pallas_src>

<mosaic_0001>
module attributes {stable_mosaic.version = 11 : i64} {
  func.func @_dynamic_se_kernel(%arg0: i32, %arg1: i32, %arg2: memref<8x16xf32, #tpu.memory_space<vmem>>, %arg3: memref<8x8xf32, #tpu.memory_space<vmem>>, %arg4: memref<8x8xf32, #tpu.memory_space<vmem>>, %arg5: memref<16x128xf32, #tpu.memory_space<vmem>>, %arg6: memref<1x128xf32, #tpu.memory_space<vmem>>, %arg7: memref<128x256xf32, #tpu.memory_space<vmem>>, %arg8: memref<1x256xf32, #tpu.memory_space<vmem>>, %arg9: memref<256x256xf32, #tpu.memory_space<vmem>>, %arg10: memref<1x256xf32, #tpu.memory_space<vmem>>, %arg11: memref<2xf32, #tpu.memory_space<smem>>, %arg12: memref<8x256xf32, #tpu.memory_space<vmem>>, %arg13: memref<8x256xf32, #tpu.memory_space<vmem>>) attributes {dimension_semantics = [#tpu.dimension_semantics<parallel>, #tpu.dimension_semantics<arbitrary>], iteration_bounds = array<i64: 1, 1>, scalar_prefetch = 0 : i64, scratch_operands = 1 : i64, tpu.core_type = #tpu.core_type<tc>, window_params = [{transform_indices = @transform_0, window_bounds = array<i64: 8, 16>}, {transform_indices = @transform_1, window_bounds = array<i64: 8, 8>}, {transform_indices = @transform_2, window_bounds = array<i64: 8, 8>}, {pipeline_mode = #tpu.pipeline_mode<synchronous>, transform_indices = @transform_3, window_bounds = array<i64: 16, 128>}, {pipeline_mode = #tpu.pipeline_mode<synchronous>, transform_indices = @transform_4, window_bounds = array<i64: 1, 128>}, {pipeline_mode = #tpu.pipeline_mode<synchronous>, transform_indices = @transform_5, window_bounds = array<i64: 128, 256>}, {pipeline_mode = #tpu.pipeline_mode<synchronous>, transform_indices = @transform_6, window_bounds = array<i64: 1, 256>}, {pipeline_mode = #tpu.pipeline_mode<synchronous>, transform_indices = @transform_7, window_bounds = array<i64: 256, 256>}, {pipeline_mode = #tpu.pipeline_mode<synchronous>, transform_indices = @transform_8, window_bounds = array<i64: 1, 256>}, {transform_indices = @transform_9, window_bounds = array<i64: 2>}, {transform_indices = @transform_10, window_bounds = array<i64: 8, 256>}]} {
    %c0_i32 = arith.constant 0 : i32
    %0 = arith.cmpi eq, %arg1, %c0_i32 : i32
    %1 = arith.extui %0 : i1 to i32
    %c0_i32_0 = arith.constant 0 : i32
    %2 = arith.cmpi ne, %1, %c0_i32_0 : i32
    scf.if %2 {
      %cst_24 = arith.constant 0.000000e+00 : f32
      %26 = vector.broadcast %cst_24 : f32 to vector<8x256xf32>
      %c0_25 = arith.constant 0 : index
      %c0_26 = arith.constant 0 : index
      %27 = vector.load %arg13[%c0_25, %c0_26] : memref<8x256xf32, #tpu.memory_space<vmem>>, vector<8x256xf32>
      tpu.vector_store %arg13[%c0_25, %c0_26], %26 {strides = array<i32>} : memref<8x256xf32, #tpu.memory_space<vmem>>, vector<8x256xf32>,
    } else {
    }
    %c0 = arith.constant 0 : index
    %c0_1 = arith.constant 0 : index
    %3 = vector.load %arg2[%c0, %c0_1] : memref<8x16xf32, #tpu.memory_space<vmem>>, vector<8x16xf32>
    %c0_2 = arith.constant 0 : index
    %c0_3 = arith.constant 0 : index
    %4 = vector.load %arg5[%c0_2, %c0_3] : memref<16x128xf32, #tpu.memory_space<vmem>>, vector<16x128xf32>
    %cst = arith.constant dense<0.000000e+00> : vector<8x128xf32>
    %5 = tpu.matmul %3, %4, %cst {dimension_numbers = #tpu.dot_dimension_numbers<[1], [0], [0], [1], [0, 0, 1, 1], [], []>} : vector<8x16xf32>, vector<16x128xf32>, vector<8x128xf32> -> vector<8x128xf32>
    %c0_4 = arith.constant 0 : index
    %c0_5 = arith.constant 0 : index
    %6 = vector.load %arg6[%c0_4, %c0_5] : memref<1x128xf32, #tpu.memory_space<vmem>>, vector<1x128xf32>
    %7 = vector.broadcast %6 : vector<1x128xf32> to vector<8x128xf32>
    %8 = arith.addf %5, %7 : vector<8x128xf32>
    %c0_6 = arith.constant 0 : index
    %c0_7 = arith.constant 0 : index
    %9 = vector.load %arg7[%c0_6, %c0_7] : memref<128x256xf32, #tpu.memory_space<vmem>>, vector<128x256xf32>
    %cst_8 = arith.constant dense<0.000000e+00> : vector<8x256xf32>
    %10 = tpu.matmul %8, %9, %cst_8 {dimension_numbers = #tpu.dot_dimension_numbers<[1], [0], [0], [1], [0, 0, 1, 1], [], []>} : vector<8x128xf32>, vector<128x256xf32>, vector<8x256xf32> -> vector<8x256xf32>
    %c0_9 = arith.constant 0 : index
    %c0_10 = arith.constant 0 : index
    %11 = vector.load %arg13[%c0_9, %c0_10] : memref<8x256xf32, #tpu.memory_space<vmem>>, vector<8x128xf32>
    %c0_11 = arith.constant 0 : index
    %c0_12 = arith.constant 0 : index
    %12 = vector.load %arg3[%c0_11, %c0_12] : memref<8x8xf32, #tpu.memory_space<vmem>>, vector<8x8xf32>
    %13 = vector.extract_strided_slice %10 {offsets = [0, 0], sizes = [8, 128], strides = [1, 1]} : vector<8x256xf32> to vector<8x128xf32>
    %cst_13 = arith.constant dense<0.000000e+00> : vector<8x128xf32>
    %14 = tpu.matmul %12, %13, %cst_13 {dimension_numbers = #tpu.dot_dimension_numbers<[1], [0], [0], [1], [0, 0, 1, 1], [], []>} : vector<8x8xf32>, vector<8x128xf32>, vector<8x128xf32> -> vector<8x128xf32>
    %15 = arith.addf %11, %14 : vector<8x128xf32>
    %c0_14 = arith.constant 0 : index
    %c0_15 = arith.constant 0 : index
    %16 = vector.load %arg13[%c0_14, %c0_15] : memref<8x256xf32, #tpu.memory_space<vmem>>, vector<8x128xf32>
    tpu.vector_store %arg13[%c0_14, %c0_15], %15 {strides = array<i32>} : memref<8x256xf32, #tpu.memory_space<vmem>>, vector<8x128xf32>,
    %c0_16 = arith.constant 0 : index
    %c128 = arith.constant 128 : index
    %17 = vector.load %arg13[%c0_16, %c128] : memref<8x256xf32, #tpu.memory_space<vmem>>, vector<8x128xf32>
    %c0_17 = arith.constant 0 : index
    %c0_18 = arith.constant 0 : index
    %18 = vector.load %arg4[%c0_17, %c0_18] : memref<8x8xf32, #tpu.memory_space<vmem>>, vector<8x8xf32>
    %19 = vector.extract_strided_slice %10 {offsets = [0, 128], sizes = [8, 128], strides = [1, 1]} : vector<8x256xf32> to vector<8x128xf32>
    %cst_19 = arith.constant dense<0.000000e+00> : vector<8x128xf32>
    %20 = tpu.matmul %18, %19, %cst_19 {dimension_numbers = #tpu.dot_dimension_numbers<[1], [0], [0], [1], [0, 0, 1, 1], [], []>} : vector<8x8xf32>, vector<8x128xf32>, vector<8x128xf32> -> vector<8x128xf32>
    %21 = arith.addf %17, %20 : vector<8x128xf32>
    %c0_20 = arith.constant 0 : index
    %c128_21 = arith.constant 128 : index
    %22 = vector.load %arg13[%c0_20, %c128_21] : memref<8x256xf32, #tpu.memory_space<vmem>>, vector<8x128xf32>
    tpu.vector_store %arg13[%c0_20, %c128_21], %21 {strides = array<i32>} : memref<8x256xf32, #tpu.memory_space<vmem>>, vector<8x128xf32>,
    %c0_i32_22 = arith.constant 0 : i32
    %23 = arith.cmpi eq, %arg1, %c0_i32_22 : i32
    %24 = arith.extui %23 : i1 to i32
    %c0_i32_23 = arith.constant 0 : i32
    %25 = arith.cmpi ne, %24, %c0_i32_23 : i32
    scf.if %25 {
      %c0_24 = arith.constant 0 : index
      %c0_25 = arith.constant 0 : index
      %26 = vector.load %arg13[%c0_24, %c0_25] : memref<8x256xf32, #tpu.memory_space<vmem>>, vector<8x256xf32>
      %c0_26 = arith.constant 0 : index
      %c0_27 = arith.constant 0 : index
      %27 = vector.load %arg8[%c0_26, %c0_27] : memref<1x256xf32, #tpu.memory_space<vmem>>, vector<1x256xf32>
      %28 = vector.broadcast %27 : vector<1x256xf32> to vector<8x256xf32>
      %29 = arith.addf %26, %28 : vector<8x256xf32>
      %c0_28 = arith.constant 0 : index
      %c0_29 = arith.constant 0 : index
      %30 = vector.load %arg9[%c0_28, %c0_29] : memref<256x256xf32, #tpu.memory_space<vmem>>, vector<256x256xf32>
      %c0_30 = arith.constant 0 : index
      %c0_31 = arith.constant 0 : index
      %31 = vector.load %arg10[%c0_30, %c0_31] : memref<1x256xf32, #tpu.memory_space<vmem>>, vector<1x256xf32>
      %32 = vector.shape_cast %31 : vector<1x256xf32> to vector<1x256xf32>
      %33 = vector.broadcast %32 : vector<1x256xf32> to vector<8x256xf32>
      %c0_32 = arith.constant 0 : index
      %34 = memref.load %arg11[%c0_32] : memref<2xf32, #tpu.memory_space<smem>>
      %c1 = arith.constant 1 : index
      %35 = memref.load %arg11[%c1] : memref<2xf32, #tpu.memory_space<smem>>
      %36 = arith.subf %35, %34 : f32
      %cst_33 = arith.constant 6.400000e+01 : f32
      %37 = arith.divf %36, %cst_33 : f32
      %cst_34 = arith.constant 5.000000e-01 : f32
      %38 = arith.mulf %cst_34, %37 : f32
      %cst_35 = arith.constant 6.000000e+00 : f32
      %39 = arith.divf %37, %cst_35 : f32
      %c0_i32_36 = arith.constant 0 : i32
      %c64_i32 = arith.constant 64 : i32
      %40 = arith.addi %c0_i32_36, %c64_i32 : i32
      %c1_i32 = arith.constant 1 : i32
      %41 = scf.for %arg14 = %c0_i32_36 to %40 step %c1_i32 iter_args(%arg15 = %29) -> (vector<8x256xf32>)  : i32 {
        %cst_39 = arith.constant dense<0.000000e+00> : vector<8x256xf32>
        %43 = tpu.matmul %arg15, %30, %cst_39 {dimension_numbers = #tpu.dot_dimension_numbers<[1], [0], [0], [1], [0, 0, 1, 1], [], []>} : vector<8x256xf32>, vector<256x256xf32>, vector<8x256xf32> -> vector<8x256xf32>
        %44 = arith.addf %43, %33 : vector<8x256xf32>
        %45 = math.tanh %44 : vector<8x256xf32>
        %46 = vector.broadcast %38 : f32 to vector<8x256xf32>
        %47 = arith.mulf %46, %45 : vector<8x256xf32>
        %48 = arith.addf %arg15, %47 : vector<8x256xf32>
        %cst_40 = arith.constant dense<0.000000e+00> : vector<8x256xf32>
        %49 = tpu.matmul %48, %30, %cst_40 {dimension_numbers = #tpu.dot_dimension_numbers<[1], [0], [0], [1], [0, 0, 1, 1], [], []>} : vector<8x256xf32>, vector<256x256xf32>, vector<8x256xf32> -> vector<8x256xf32>
        %50 = arith.addf %49, %33 : vector<8x256xf32>
        %51 = math.tanh %50 : vector<8x256xf32>
        %52 = vector.broadcast %38 : f32 to vector<8x256xf32>
        %53 = arith.mulf %52, %51 : vector<8x256xf32>
        %54 = arith.addf %arg15, %53 : vector<8x256xf32>
        %cst_41 = arith.constant dense<0.000000e+00> : vector<8x256xf32>
        %55 = tpu.matmul %54, %30, %cst_41 {dimension_numbers = #tpu.dot_dimension_numbers<[1], [0], [0], [1], [0, 0, 1, 1], [], []>} : vector<8x256xf32>, vector<256x256xf32>, vector<8x256xf32> -> vector<8x256xf32>
        %56 = arith.addf %55, %33 : vector<8x256xf32>
        %57 = math.tanh %56 : vector<8x256xf32>
        %58 = vector.broadcast %37 : f32 to vector<8x256xf32>
        %59 = arith.mulf %58, %57 : vector<8x256xf32>
        %60 = arith.addf %arg15, %59 : vector<8x256xf32>
        %cst_42 = arith.constant dense<0.000000e+00> : vector<8x256xf32>
        %61 = tpu.matmul %60, %30, %cst_42 {dimension_numbers = #tpu.dot_dimension_numbers<[1], [0], [0], [1], [0, 0, 1, 1], [], []>} : vector<8x256xf32>, vector<256x256xf32>, vector<8x256xf32> -> vector<8x256xf32>
        %62 = arith.addf %61, %33 : vector<8x256xf32>
        %63 = math.tanh %62 : vector<8x256xf32>
        %64 = arith.addf %51, %57 : vector<8x256xf32>
        %cst_43 = arith.constant 2.000000e+00 : f32
        %65 = vector.broadcast %cst_43 : f32 to vector<8x256xf32>
        %66 = arith.mulf %65, %64 : vector<8x256xf32>
        %67 = arith.addf %45, %66 : vector<8x256xf32>
        %68 = arith.addf %67, %63 : vector<8x256xf32>
        %69 = vector.broadcast %39 : f32 to vector<8x256xf32>
        %70 = arith.mulf %69, %68 : vector<8x256xf32>
        %71 = arith.addf %arg15, %70 : vector<8x256xf32>
        scf.yield %71 : vector<8x256xf32>
      }
      %c0_37 = arith.constant 0 : index
      %c0_38 = arith.constant 0 : index
      %42 = vector.load %arg12[%c0_37, %c0_38] : memref<8x256xf32, #tpu.memory_space<vmem>>, vector<8x256xf32>
      tpu.vector_store %arg12[%c0_37, %c0_38], %41 {strides = array<i32>} : memref<8x256xf32, #tpu.memory_space<vmem>>, vector<8x256xf32>,
    } else {
    }
    return
  }
  func.func @transform_0(%arg0: i32, %arg1: i32) -> (i32, i32) {
    %c0_i32 = arith.constant 0 : i32
    %c0_i32_0 = arith.constant 0 : i32
    return %arg1, %c0_i32 : i32, i32
  }
  func.func @transform_1(%arg0: i32, %arg1: i32) -> (i32, i32) {
    %c0_i32 = arith.constant 0 : i32
    return %arg0, %arg1 : i32, i32
  }
  func.func @transform_2(%arg0: i32, %arg1: i32) -> (i32, i32) {
    %c0_i32 = arith.constant 0 : i32
    return %arg0, %arg1 : i32, i32
  }
  func.func @transform_3(%arg0: i32, %arg1: i32) -> (i32, i32) {
    %c0_i32 = arith.constant 0 : i32
    %c0_i32_0 = arith.constant 0 : i32
    %c0_i32_1 = arith.constant 0 : i32
    return %c0_i32, %c0_i32_0 : i32, i32
  }
  func.func @transform_4(%arg0: i32, %arg1: i32) -> (i32, i32) {
    %c0_i32 = arith.constant 0 : i32
    %c0_i32_0 = arith.constant 0 : i32
    %c0_i32_1 = arith.constant 0 : i32
    return %c0_i32, %c0_i32_0 : i32, i32
  }
  func.func @transform_5(%arg0: i32, %arg1: i32) -> (i32, i32) {
    %c0_i32 = arith.constant 0 : i32
    %c0_i32_0 = arith.constant 0 : i32
    %c0_i32_1 = arith.constant 0 : i32
    return %c0_i32, %c0_i32_0 : i32, i32
  }
  func.func @transform_6(%arg0: i32, %arg1: i32) -> (i32, i32) {
    %c0_i32 = arith.constant 0 : i32
    %c0_i32_0 = arith.constant 0 : i32
    %c0_i32_1 = arith.constant 0 : i32
    return %c0_i32, %c0_i32_0 : i32, i32
  }
  func.func @transform_7(%arg0: i32, %arg1: i32) -> (i32, i32) {
    %c0_i32 = arith.constant 0 : i32
    %c0_i32_0 = arith.constant 0 : i32
    %c0_i32_1 = arith.constant 0 : i32
    return %c0_i32, %c0_i32_0 : i32, i32
  }
  func.func @transform_8(%arg0: i32, %arg1: i32) -> (i32, i32) {
    %c0_i32 = arith.constant 0 : i32
    %c0_i32_0 = arith.constant 0 : i32
    %c0_i32_1 = arith.constant 0 : i32
    return %c0_i32, %c0_i32_0 : i32, i32
  }
  func.func @transform_9(%arg0: i32, %arg1: i32) -> i32 {
    %c0_i32 = arith.constant 0 : i32
    %c0_i32_0 = arith.constant 0 : i32
    return %c0_i32 : i32
  }
  func.func @transform_10(%arg0: i32, %arg1: i32) -> (i32, i32) {
    %c0_i32 = arith.constant 0 : i32
    %c0_i32_0 = arith.constant 0 : i32
    return %arg0, %c0_i32 : i32, i32
  }
}

</mosaic_0001>

<bundles_post_ra>
// kernel: tpu_custom_call.1
= control target key start
LH: loop header
LB: loop body
LE: loop exit
PB: predicated region body
PF: predicated region fallthrough
CT: control target
= control target key end

     0   :  { %15 = vsyncpa [#allocation4], 0  ;;  %s2153_s0 = inlined_call_operand.hbm [shape: f32[8,16], index: 0, kind: input, shape index: {}]   ;;  %s2154_s1 = inlined_call_operand.hbm [shape: f32[8,8], index: 1, kind: input, shape index: {}]   ;;  %s2155_s2 = inlined_call_operand.hbm [shape: f32[8,8], index: 2, kind: input, shape index: {}]   ;;  %s2156_s3 = inlined_call_operand.hbm [shape: f32[16,128], index: 3, kind: input, shape index: {}]   ;;  %s2157_s4 = inlined_call_operand.vmem [shape: f32[1,128], index: 4, kind: input, shape index: {}]   ;;  %s2158_s5 = inlined_call_operand.hbm [shape: f32[128,256], index: 5, kind: input, shape index: {}]   ;;  %s2159_s6 = inlined_call_operand.vmem [shape: f32[1,256], index: 6, kind: input, shape index: {}]   ;;  %s2160_s7 = inlined_call_operand.hbm [shape: f32[256,256], index: 7, kind: input, shape index: {}]   ;;  %s2161_s8 = inlined_call_operand.vmem [shape: f32[1,256], index: 8, kind: input, shape index: {}]   ;;  %s2162_s9 = inlined_call_operand.vmem [shape: f32[2], index: 9, kind: input, shape index: {}]   ;;  %s2163_s10 = inlined_call_operand.hbm [shape: f32[8,256], index: 10, kind: output, shape index: {}]  }
   0x1   :  { %16 = vsyncpa [#allocation8], 0 }
   0x2   :  { %17 = vsyncpa [#allocation11], 0 }
   0x3   :  { %18 = vsyncpa [#allocation14], 0 }
   0x4   :  { %19 = vsyncpa [#allocation6], 0 }
   0x5   :  { %20 = vsyncpa [#allocation5], 0  ;;  %s1514_s13 = smov [#allocation7]   ;;  %s1515_s15 = smov [#allocation10]  }
   0x6   :  { %s37_s14 = sshll.u32 %s1514_s13, 4  ;;  %s56_s16 = sshll.u32 %s1515_s15, 4  ;;  %s38_s14 = int_to_ptr.vmem [resolvable:$true] %s37_s14  ;;  %s1584_s16 = int_to_ptr.vmem [resolvable:$true] %s56_s16 }
   0x7   :  { %s1312_s19 = scalar_lea.hbm %s2154_s1, 128 }
   0x8   :  { %p1313_p0 = scmp.ne.s32.totalorder %s2154_s1, %s1312_s19  ;;  %p1316_p1 = scmp.lt.u32.totalorder %s1312_s19, %s2154_s1 }
   0xa   :  { %p1318_p2 = pnand %p1316_p1, %p1313_p0 }
   0xc   :  { %1321 = shalt.err (!%p1318_p2)
}
   0xd   :  { %s1322_s24 = scalar_lea.vmem %s38_s14, 128  ;;  %p1327_p4 = scmp.lt.s32.totalorder %s38_s14, %s38_s14 }
   0xe   :  { %p1323_p3 = scmp.ne.s32.totalorder %s38_s14, %s1322_s24  ;;  %p1328_p5 = scmp.lt.s32.totalorder %s1322_s24, %s1322_s24 }
  0x10   :  { %p1329_p6 = por %p1328_p5, %p1327_p4 }
  0x12   :  { %p1330_p7 = pnand %p1329_p6, %p1323_p3 }
  0x14   :  { %1333 = shalt.err (!%p1330_p7)
}
  0x15   :  { %40 = dma.hbm_to_vmem [thread:$0]  %s2154_s1, 128, %s38_s14, [#allocation8]  }
  0x16   :  { %s1334_s29 = scalar_lea.hbm %s2156_s3, 256 }
  0x17   :  { %p1335_p8 = scmp.ne.s32.totalorder %s2156_s3, %s1334_s29  ;;  %p1338_p9 = scmp.lt.u32.totalorder %s1334_s29, %s2156_s3 }
  0x19   :  { %p1340_p10 = pnand %p1338_p9, %p1335_p8 }
  0x1b   :  { %1343 = shalt.err (!%p1340_p10)
}
  0x1c   :  { %s1344_s15 = scalar_lea.vmem %s1584_s16, 256  ;;  %p1349_p12 = scmp.lt.s32.totalorder %s1584_s16, %s1584_s16 }
  0x1d   :  { %p1345_p11 = scmp.ne.s32.totalorder %s1584_s16, %s1344_s15  ;;  %p1350_p13 = scmp.lt.s32.totalorder %s1344_s15, %s1344_s15 }
  0x1f   :  { %p1351_p0 = por %p1350_p13, %p1349_p12 }
  0x21   :  { %p1352_p1 = pnand %p1351_p0, %p1345_p11 }
  0x23   :  { %1355 = shalt.err (!%p1352_p1)
}
  0x24   :  { %s1516_s1 = smov 128   ;;  %s1517_s14 = smov 8  }
  0x25   :  { %62 = dma.hbm_to_vmem [thread:$0]  %s2156_s3, 256, %s1584_s16, [#allocation11], %s1516_s1, %s1516_s1, %s1517_s14  }
  0x26   :  { %s1518_s19 = smov [#allocation3]   ;;  %s1519_s21 = smov [#allocation9]  }
  0x27   :  { %s27_s20 = sshll.u32 %s1518_s19, 4  ;;  %s47_s22 = sshll.u32 %s1519_s21, 4  ;;  %s28_s20 = int_to_ptr.vmem [resolvable:$true] %s27_s20  ;;  %s48_s22 = int_to_ptr.vmem [resolvable:$true] %s47_s22 }
  0x28   :  { %s1356_s25 = scalar_lea.hbm %s2153_s0, 128 }
  0x29   :  { %p1357_p2 = scmp.ne.s32.totalorder %s2153_s0, %s1356_s25  ;;  %p1360_p3 = scmp.lt.u32.totalorder %s1356_s25, %s2153_s0 }
  0x2b   :  { %p1362_p4 = pnand %p1360_p3, %p1357_p2 }
  0x2d   :  { %1365 = shalt.err (!%p1362_p4)
}
  0x2e   :  { %s1366_s3 = scalar_lea.vmem %s28_s20, 128  ;;  %p1371_p6 = scmp.lt.s32.totalorder %s28_s20, %s28_s20 }
  0x2f   :  { %p1367_p5 = scmp.ne.s32.totalorder %s28_s20, %s1366_s3  ;;  %p1372_p7 = scmp.lt.s32.totalorder %s1366_s3, %s1366_s3 }
  0x31   :  { %p1373_p8 = por %p1372_p7, %p1371_p6 }
  0x33   :  { %p1374_p9 = pnand %p1373_p8, %p1367_p5 }
  0x35   :  { %1377 = shalt.err (!%p1374_p9)
}
  0x36   :  { %30 = dma.hbm_to_vmem [thread:$0]  %s2153_s0, 128, %s28_s20, [#allocation4]  }
  0x37   :  { %s1378_s13 = scalar_lea.hbm %s2155_s2, 128 }
  0x38   :  { %p1379_p10 = scmp.ne.s32.totalorder %s2155_s2, %s1378_s13  ;;  %p1382_p11 = scmp.lt.u32.totalorder %s1378_s13, %s2155_s2 }
  0x3a   :  { %p1384_p12 = pnand %p1382_p11, %p1379_p10 }
  0x3c   :  { %1387 = shalt.err (!%p1384_p12)
}
  0x3d   :  { %s1388_s18 = scalar_lea.vmem %s48_s22, 128  ;;  %p1393_p0 = scmp.lt.s32.totalorder %s48_s22, %s48_s22 }
  0x3e   :  { %p1389_p13 = scmp.ne.s32.totalorder %s48_s22, %s1388_s18  ;;  %p1394_p1 = scmp.lt.s32.totalorder %s1388_s18, %s1388_s18 }
  0x40   :  { %p1395_p2 = por %p1394_p1, %p1393_p0 }
  0x42   :  { %p1396_p3 = pnand %p1395_p2, %p1389_p13 }
  0x44   :  { %1399 = shalt.err (!%p1396_p3)
}
  0x45   :  { %50 = dma.hbm_to_vmem [thread:$0]  %s2155_s2, 128, %s48_s22, [#allocation8]  }
  0x46   :  { %s1520_s20 = smov [#allocation12]   ;;  %s1400_s25 = scalar_lea.hbm %s2158_s5, 4096 }
  0x47   :  { %s70_s21 = sshll.u32 %s1520_s20, 4  ;;  %p1401_p4 = scmp.ne.s32.totalorder %s2158_s5, %s1400_s25  ;;  %s71_s21 = int_to_ptr.vmem [resolvable:$true] %s70_s21 }
  0x48   :  { %p1404_p5 = scmp.lt.u32.totalorder %s1400_s25, %s2158_s5 }
  0x4a   :  { %p1406_p6 = pnand %p1404_p5, %p1401_p4 }
  0x4c   :  { %1409 = shalt.err (!%p1406_p6)
}
  0x4d   :  { %s1410_s3 = scalar_lea.vmem %s71_s21, 4096  ;;  %p1415_p8 = scmp.lt.s32.totalorder %s71_s21, %s71_s21 }
  0x4e   :  { %p1411_p7 = scmp.ne.s32.totalorder %s71_s21, %s1410_s3  ;;  %p1416_p9 = scmp.lt.s32.totalorder %s1410_s3, %s1410_s3 }
  0x50   :  { %p1417_p10 = por %p1416_p9, %p1415_p8 }
  0x52   :  { %p1418_p11 = pnand %p1417_p10, %p1411_p7 }
  0x54   :  { %1421 = shalt.err (!%p1418_p11)
}
  0x55   :  { %s1521_s2 = smov 256   ;;  %s1522_s22 = smov 16  }
  0x56   :  { %76 = dma.hbm_to_vmem [thread:$0]  %s2158_s5, 4096, %s71_s21, [#allocation11], %s1521_s2, %s1521_s2, %s1522_s22  }
  0x57   :  { %s1523_s11 = smov [#allocation13]   ;;  %s99_s1 = sshll.u32 %s2162_s9, 4  ;;  %s100_s1 = int_to_ptr.vmem [resolvable:$true] %s99_s1 }
  0x58   :  { %s84_s12 = sshll.u32 %s1523_s11, 4  ;;  %s1422_s18 = scalar_lea.hbm %s2160_s7, 8192  ;;  %s85_s12 = int_to_ptr.vmem [resolvable:$true] %s84_s12 }
  0x59   :  { %p1423_p12 = scmp.ne.s32.totalorder %s2160_s7, %s1422_s18  ;;  %p1426_p13 = scmp.lt.u32.totalorder %s1422_s18, %s2160_s7 }
  0x5b   :  { %p1428_p0 = pnand %p1426_p13, %p1423_p12 }
  0x5d   :  { %1431 = shalt.err (!%p1428_p0)
}
  0x5e   :  { %s1432_s5 = scalar_lea.vmem %s85_s12, 8192  ;;  %p1437_p2 = scmp.lt.s32.totalorder %s85_s12, %s85_s12 }
  0x5f   :  { %p1433_p1 = scmp.ne.s32.totalorder %s85_s12, %s1432_s5  ;;  %p1438_p3 = scmp.lt.s32.totalorder %s1432_s5, %s1432_s5 }
  0x61   :  { %p1439_p4 = por %p1438_p3, %p1437_p2 }
  0x63   :  { %p1440_p5 = pnand %p1439_p4, %p1433_p1 }
  0x65   :  { %1443 = shalt.err (!%p1440_p5)
}
  0x66   :  { %90 = dma.hbm_to_vmem [thread:$0]  %s2160_s7, 8192, %s85_s12, [#allocation14], %s1521_s2, %s1521_s2, %s1522_s22  }
  0x67   :  { %s1444_s24 = scalar_lea.vmem %s100_s1, 16  ;;  %p1449_p7 = scmp.lt.s32.totalorder %s100_s1, %s100_s1 }
  0x68   :  { %p1445_p6 = scmp.ne.s32.totalorder %s100_s1, %s1444_s24  ;;  %p1450_p8 = scmp.lt.s32.totalorder %s1444_s24, %s1444_s24 }
  0x6a   :  { %p1451_p9 = por %p1450_p8, %p1449_p7 }
  0x6c   :  { %p1452_p10 = pnand %p1451_p9, %p1445_p6 }
  0x6e   :  { %1455 = shalt.err (!%p1452_p10)
}
  0x6f   :  { %s1524_s25 = smov [#allocation15]  }
  0x70   :  { %102 = dma.vmem_to_smem %s100_s1, 16, %s1524_s25, [#allocation6]  }
  0x71   :  { %1490 = dma.done.wait [#allocation4], 128  }
  0x72   :  { %1491 = vsyncadd [#allocation4], 4294967168 }
  0x73   :  { %1492 = dma.done.wait [#allocation8], 256  }
  0x74   :  { %1493 = vsyncadd [#allocation8], 4294967040 }
  0x75   :  { %1494 = dma.done.wait [#allocation11], 4352  }
  0x76   :  { %1495 = vsyncadd [#allocation11], 4294962944 }
  0x77   :  { %1496 = dma.done.wait [#allocation14], 8192  }
  0x78   :  { %1497 = vsyncadd [#allocation14], 4294959104 }
  0x79   :  { %1498 = dma.done.wait [#allocation6], 16  }
  0x7a   :  { %1499 = vsyncadd [#allocation6], 4294967280 }
  0x7b   :  { %124 = sfence }
  0x7c   :  { %v132_v0 = vld [vmem:[#allocation10] sm:$0xff]  ;;  %v133_v1 = vld [vmem:[#allocation10 + $0x8] sm:$0xff]  ;;  %v1525_v2 = vmov 0.0|0.0   ;;  %vm1526_vm0 = vmmov 0   ;;  %v1527_v4 = vmov 0.0   ;;  %v216_v6 = vld [vmem:[#allocation12 + $0x8] sm:$0xff]  ;;  %v480_v62 = vlaneseq }
  0x7d   :  { %966 = vmatprep.subr.bf16.mxu0 %v1525_v2  ;;  %v967_v3 = vpack.c.bf16 %v133_v1, %v132_v0  ;;  %953 = vmatprep.mubr.msk.f32.mxu0 %vm1526_vm0, %v1527_v4  ;;  %v131_v5 = vld [vmem:[#allocation3] sm:$0xff]  ;;  %v215_v8 = vld [vmem:[#allocation12] sm:$0xff]  ;;  %v217_v10 = vld [vmem:[#allocation12 + $0x10] sm:$0xff]  ;;  %vm141_vm1 = vcmask 130048   ;;  %vm320_vm2 = vcmask 64512   ;;  %s941_s27 = sld [smem:[#allocation15 + $0x1]] }
  0x7e   :  { %v218_v7 = vld [vmem:[#allocation12 + $0x18] sm:$0xff]  ;;  %v220_v11 = vld [vmem:[#allocation12 + $0x28] sm:$0xff]  ;;  %311 = vmatprep.mubr.f32.mxu1 %v1527_v4  ;;  %v971_v13 = vpack.c.bf16 %v217_v10, %v215_v8  ;;  %v219_v15 = vld [vmem:[#allocation12 + $0x20] sm:$0xff]  ;;  %v1678_v63 = vshrl.u32 %v480_v62, 7  ;;  %s1836_s11 = smov 0  }
  0x7f   :  { %v969_v9 = vpack.c.bf16 %v218_v7, %v216_v6  ;;  %v222_v12 = vld [vmem:[#allocation12 + $0x38] sm:$0xff]  ;;  %968 = vmatpush3.bf16.msra.mxu0 %v967_v3  ;;  %v221_v16 = vld [vmem:[#allocation12 + $0x30] sm:$0xff]  ;;  %v224_v17 = vld [vmem:[#allocation12 + $0x48] sm:$0xff] }
  0x80   :  { %v973_v14 = vpack.c.bf16 %v222_v12, %v220_v11  ;;  %v226_v18 = vld [vmem:[#allocation12 + $0x58] sm:$0xff]  ;;  %956 = vmatprep.subr.mxu0 %v1527_v4  ;;  %v975_v19 = vpack.c.bf16 %v221_v16, %v219_v15  ;;  %v223_v21 = vld [vmem:[#allocation12 + $0x40] sm:$0xff]  ;;  %v225_v22 = vld [vmem:[#allocation12 + $0x50] sm:$0xff]  ;;  %v2165_v0 = vsub.s32 0, %v1678_v63  ;;  %v2164_v3 = vsub.s32 1, %v1678_v63 }
  0x81   :  { %970 = vmatprep.subr.bf16.mxu1 %v969_v9  ;;  %v977_v20 = vpack.c.bf16 %v226_v18, %v224_v17  ;;  %v228_v23 = vld [vmem:[#allocation12 + $0x68] sm:$0xff]  ;;  %v230_v24 = vld [vmem:[#allocation12 + $0x78] sm:$0xff]  ;;  %v979_v25 = vpack.c.bf16 %v225_v22, %v223_v21  ;;  %v227_v27 = vld [vmem:[#allocation12 + $0x60] sm:$0xff] }
  0x82   :  { %972 = vmatpush1.bf16.msra.mxu1 %v971_v13  ;;  %954 = vmatmul.mubr.msk.f32.vlgmr.msra.gmra.mrb[0].mxu0 %vm141_vm1, %v131_v5  ;;  %v981_v26 = vpack.c.bf16 %v230_v24, %v228_v23  ;;  %v229_v28 = vld [vmem:[#allocation12 + $0x70] sm:$0xff]  ;;  %v232_v29 = vld [vmem:[#allocation12 + $0x88] sm:$0xff]  ;;  %v234_v30 = vld [vmem:[#allocation12 + $0x98] sm:$0xff] }
  0x83   :  { %974 = vmatprep.subr.bf16.mxu1 %v973_v14  ;;  %958 = vmatprep.mubr.msk.f32.mxu0 %vm1526_vm0, %v1527_v4  ;;  %v983_v31 = vpack.c.bf16 %v229_v28, %v227_v27  ;;  %v985_v32 = vpack.c.bf16 %v234_v30, %v232_v29  ;;  %v231_v33 = vld [vmem:[#allocation12 + $0x80] sm:$0xff]  ;;  %v233_v34 = vld [vmem:[#allocation12 + $0x90] sm:$0xff]  ;;  %v236_v35 = vld [vmem:[#allocation12 + $0xa8] sm:$0xff] }
  0x84   :  { %v238_v36 = vld [vmem:[#allocation12 + $0xb8] sm:$0xff]  ;;  %v987_v37 = vpack.c.bf16 %v233_v34, %v231_v33  ;;  %v235_v39 = vld [vmem:[#allocation12 + $0xa0] sm:$0xff]  ;;  %v237_v40 = vld [vmem:[#allocation12 + $0xb0] sm:$0xff] }
  0x85   :  { %v989_v38 = vpack.c.bf16 %v238_v36, %v236_v35  ;;  %v240_v41 = vld [vmem:[#allocation12 + $0xc8] sm:$0xff]  ;;  %v242_v42 = vld [vmem:[#allocation12 + $0xd8] sm:$0xff]  ;;  %v991_v43 = vpack.c.bf16 %v237_v40, %v235_v39  ;;  %v239_v45 = vld [vmem:[#allocation12 + $0xc0] sm:$0xff] }
  0x86   :  { %976 = vmatpush1.bf16.msra.mxu1 %v975_v19  ;;  %v993_v44 = vpack.c.bf16 %v242_v42, %v240_v41  ;;  %v241_v46 = vld [vmem:[#allocation12 + $0xd0] sm:$0xff]  ;;  %v244_v47 = vld [vmem:[#allocation12 + $0xe8] sm:$0xff]  ;;  %v246_v48 = vld [vmem:[#allocation12 + $0xf8] sm:$0xff] }
  0x87   :  { %978 = vmatprep.subr.bf16.mxu1 %v977_v20  ;;  %v995_v49 = vpack.c.bf16 %v241_v46, %v239_v45  ;;  %v997_v50 = vpack.c.bf16 %v246_v48, %v244_v47  ;;  %v243_v51 = vld [vmem:[#allocation12 + $0xe0] sm:$0xff]  ;;  %v245_v52 = vld [vmem:[#allocation12 + $0xf0] sm:$0xff]  ;;  %v937_v54 = vld [vmem:[%s2157_s4] ss:$0 sm:$0xff]  ;;  %s568_s4 = sld [smem:[#allocation15]] }
  0x88   :  { %v999_v53 = vpack.c.bf16 %v245_v52, %v243_v51  ;;  %v319_v58 = vld [vmem:[#allocation7] sm:$0xff]  ;;  %v397_v61 = vld [vmem:[#allocation9] sm:$0xff]  ;;  %v556_v1 = vld [vmem:[%s2161_s8] sm:$0x3] }
  0x89   :  { %v1686_v2 = vrot.slane %v556_v1, %v2165_v0  ;;  %v1695_v5 = vld [vmem:[#allocation13] sm:$0xff]  ;;  %v1697_v6 = vld [vmem:[#allocation13 + $0x8] sm:$0xff]  ;;  %v1699_v7 = vld [vmem:[#allocation13 + $0x10] sm:$0xff] }
  0x8a   :  { %980 = vmatpush1.bf16.msra.mxu1 %v979_v25  ;;  %2170 = vst [vmem:[#allocation25_spill] sm:$0xff] %v1695_v5  ;;  %2171 = vst [vmem:[#allocation26_spill] sm:$0xff] %v1697_v6  ;;  %v1702_v8 = vld [vmem:[#allocation13 + $0x18] sm:$0xff]  ;;  %v1704_v9 = vld [vmem:[#allocation13 + $0x20] sm:$0xff] }
  0x8b   :  { %982 = vmatprep.subr.bf16.mxu1 %v981_v26  ;;  %2168 = vst [vmem:[#allocation23_spill] sm:$0xff] %v1686_v2  ;;  %2172 = vst [vmem:[#allocation27_spill] sm:$0xff] %v1699_v7  ;;  %v1706_v10 = vld [vmem:[#allocation13 + $0x28] sm:$0xff]  ;;  %v1709_v11 = vld [vmem:[#allocation13 + $0x30] sm:$0xff] }
  0x8c   :  { %2173 = vst [vmem:[#allocation28_spill] sm:$0xff] %v1702_v8  ;;  %2174 = vst [vmem:[#allocation29_spill] sm:$0xff] %v1704_v9  ;;  %v1711_v12 = vld [vmem:[#allocation13 + $0x38] sm:$0xff]  ;;  %v1713_v13 = vld [vmem:[#allocation13 + $0x40] sm:$0xff] }
  0x8d   :  { %s570_s3 = ssub.f32 %s941_s27, %s568_s4  ;;  %2175 = vst [vmem:[#allocation30_spill] sm:$0xff] %v1706_v10  ;;  %2176 = vst [vmem:[#allocation31_spill] sm:$0xff] %v1709_v11  ;;  %v1715_v14 = vld [vmem:[#allocation13 + $0x48] sm:$0xff]  ;;  %v1717_v15 = vld [vmem:[#allocation13 + $0x50] sm:$0xff] }
  0x8e   :  { %984 = vmatpush1.bf16.msra.mxu1 %v983_v31  ;;  %2177 = vst [vmem:[#allocation32_spill] sm:$0xff] %v1711_v12  ;;  %2178 = vst [vmem:[#allocation33_spill] sm:$0xff] %v1713_v13  ;;  %v1719_v16 = vld [vmem:[#allocation13 + $0x58] sm:$0xff]  ;;  %v1721_v17 = vld [vmem:[#allocation13 + $0x60] sm:$0xff] }
  0x8f   :  { %986 = vmatprep.subr.bf16.mxu1 %v985_v32  ;;  %s1689_s2 = smul.f32 0.015625, %s570_s3  ;;  %2179 = vst [vmem:[#allocation34_spill] sm:$0xff] %v1715_v14  ;;  %2180 = vst [vmem:[#allocation35_spill] sm:$0xff] %v1717_v15  ;;  %v1723_v18 = vld [vmem:[#allocation13 + $0x68] sm:$0xff]  ;;  %v1725_v19 = vld [vmem:[#allocation13 + $0x70] sm:$0xff] }
  0x90   :  { %2181 = vst [vmem:[#allocation36_spill] sm:$0xff] %v1719_v16  ;;  %2182 = vst [vmem:[#allocation37_spill] sm:$0xff] %v1721_v17  ;;  %v1727_v20 = vld [vmem:[#allocation13 + $0x78] sm:$0xff]  ;;  %v1729_v21 = vld [vmem:[#allocation13 + $0x80] sm:$0xff] }
  0x91   :  { %s574_s8 = smul.f32 0.5, %s1689_s2  ;;  %2183 = vst [vmem:[#allocation38_spill] sm:$0xff] %v1723_v18  ;;  %2184 = vst [vmem:[#allocation39_spill] sm:$0xff] %v1725_v19  ;;  %v1731_v22 = vld [vmem:[#allocation13 + $0x88] sm:$0xff]  ;;  %v1733_v23 = vld [vmem:[#allocation13 + $0x90] sm:$0xff] }
  0x92   :  { %988 = vmatpush1.bf16.msra.mxu1 %v987_v37  ;;  %s577_s22 = smul.f32 0.16666667, %s1689_s2  ;;  %2185 = vst [vmem:[#allocation40_spill] sm:$0xff] %v1727_v20  ;;  %2186 = vst [vmem:[#allocation41_spill] sm:$0xff] %v1729_v21  ;;  %v1735_v24 = vld [vmem:[#allocation13 + $0x98] sm:$0xff]  ;;  %v1737_v25 = vld [vmem:[#allocation13 + $0xa0] sm:$0xff] }
  0x93   :  { %990 = vmatprep.subr.bf16.mxu1 %v989_v38  ;;  %2187 = vst [vmem:[#allocation42_spill] sm:$0xff] %v1731_v22  ;;  %2188 = vst [vmem:[#allocation43_spill] sm:$0xff] %v1733_v23  ;;  %v1739_v26 = vld [vmem:[#allocation13 + $0xa8] sm:$0xff]  ;;  %v1741_v27 = vld [vmem:[#allocation13 + $0xb0] sm:$0xff] }
  0x94   :  { %2189 = vst [vmem:[#allocation44_spill] sm:$0xff] %v1735_v24  ;;  %2190 = vst [vmem:[#allocation45_spill] sm:$0xff] %v1737_v25  ;;  %v1743_v28 = vld [vmem:[#allocation13 + $0xb8] sm:$0xff]  ;;  %v1745_v29 = vld [vmem:[#allocation13 + $0xc0] sm:$0xff] }
  0x95   :  { %2191 = vst [vmem:[#allocation46_spill] sm:$0xff] %v1739_v26  ;;  %2192 = vst [vmem:[#allocation47_spill] sm:$0xff] %v1741_v27  ;;  %v1747_v30 = vld [vmem:[#allocation13 + $0xc8] sm:$0xff]  ;;  %v1749_v31 = vld [vmem:[#allocation13 + $0xd0] sm:$0xff] }
  0x96   :  { %992 = vmatpush1.bf16.msra.mxu1 %v991_v43  ;;  %2193 = vst [vmem:[#allocation48_spill] sm:$0xff] %v1743_v28  ;;  %2194 = vst [vmem:[#allocation49_spill] sm:$0xff] %v1745_v29  ;;  %v1751_v32 = vld [vmem:[#allocation13 + $0xd8] sm:$0xff]  ;;  %v1753_v33 = vld [vmem:[#allocation13 + $0xe0] sm:$0xff] }
  0x97   :  { %994 = vmatprep.subr.bf16.mxu1 %v993_v44  ;;  %2195 = vst [vmem:[#allocation50_spill] sm:$0xff] %v1747_v30  ;;  %2196 = vst [vmem:[#allocation51_spill] sm:$0xff] %v1749_v31  ;;  %v1755_v34 = vld [vmem:[#allocation13 + $0xe8] sm:$0xff]  ;;  %v1757_v35 = vld [vmem:[#allocation13 + $0xf0] sm:$0xff] }
  0x98   :  { %2197 = vst [vmem:[#allocation52_spill] sm:$0xff] %v1751_v32  ;;  %2198 = vst [vmem:[#allocation53_spill] sm:$0xff] %v1753_v33  ;;  %v1759_v36 = vld [vmem:[#allocation13 + $0xf8] sm:$0xff]  ;;  %v1761_v37 = vld [vmem:[#allocation13 + $0x100] sm:$0xff] }
  0x99   :  { %2199 = vst [vmem:[#allocation54_spill] sm:$0xff] %v1755_v34  ;;  %2200 = vst [vmem:[#allocation55_spill] sm:$0xff] %v1757_v35  ;;  %v1763_v38 = vld [vmem:[#allocation13 + $0x108] sm:$0xff]  ;;  %v1765_v39 = vld [vmem:[#allocation13 + $0x110] sm:$0xff] }
  0x9a   :  { %996 = vmatpush1.bf16.msra.mxu1 %v995_v49  ;;  %2201 = vst [vmem:[#allocation56_spill] sm:$0xff] %v1759_v36  ;;  %2202 = vst [vmem:[#allocation57_spill] sm:$0xff] %v1761_v37  ;;  %v1767_v40 = vld [vmem:[#allocation13 + $0x118] sm:$0xff]  ;;  %v1769_v41 = vld [vmem:[#allocation13 + $0x120] sm:$0xff] }
  0x9b   :  { %998 = vmatprep.subr.bf16.mxu1 %v997_v50  ;;  %v1771_v42 = vld [vmem:[#allocation13 + $0x128] sm:$0xff]  ;;  %v1773_v43 = vld [vmem:[#allocation13 + $0x130] sm:$0xff]  ;;  %v1775_v44 = vld [vmem:[#allocation13 + $0x138] sm:$0xff] }
  0x9c   :  { %v1777_v45 = vld [vmem:[#allocation13 + $0x140] sm:$0xff]  ;;  %v1779_v46 = vld [vmem:[#allocation13 + $0x148] sm:$0xff]  ;;  %v1781_v47 = vld [vmem:[#allocation13 + $0x150] sm:$0xff] }
  0x9d   :  { %v1783_v48 = vld [vmem:[#allocation13 + $0x158] sm:$0xff]  ;;  %v1785_v49 = vld [vmem:[#allocation13 + $0x160] sm:$0xff]  ;;  %v1787_v50 = vld [vmem:[#allocation13 + $0x168] sm:$0xff] }
  0x9e   :  { %1000 = vmatpush1.bf16.msra.mxu1 %v999_v53  ;;  %v1789_v51 = vld [vmem:[#allocation13 + $0x170] sm:$0xff]  ;;  %v1791_v52 = vld [vmem:[#allocation13 + $0x178] sm:$0xff]  ;;  %v1793_v53 = vld [vmem:[#allocation13 + $0x180] sm:$0xff] }
  0x9f   :  { %2203 = vst [vmem:[#allocation58_spill] sm:$0xff] %v1793_v53  ;;  %v1811_v62 = vld [vmem:[#allocation13 + $0x1c8] sm:$0xff]  ;;  %v1817_v0 = vld [vmem:[#allocation13 + $0x1e0] sm:$0xff]  ;;  %v1821_v2 = vld [vmem:[#allocation13 + $0x1f0] sm:$0xff] }
  0xa0   :  { %2210 = vst [vmem:[#allocation65_spill] sm:$0xff] %v1811_v62  ;;  %2213 = vst [vmem:[#allocation68_spill] sm:$0xff] %v1817_v0 }
  0xa1   :  { %2215 = vst [vmem:[#allocation70_spill] sm:$0xff] %v1821_v2 }
 0x155   :  { %v211_v55 = vpop.f32.mrb[0].mxu0 }
 0x156   :  { %v212_v56 = vadd.f32 %v937_v54, %v211_v55  ;;  %v955_v57 = vpop.f32.mrb[1].mxu0  ;;  %v1795_v54 = vld [vmem:[#allocation13 + $0x188] sm:$0xff]  ;;  %v1797_v55 = vld [vmem:[#allocation13 + $0x190] sm:$0xff] }
 0x157   :  { %2204 = vst [vmem:[#allocation59_spill] sm:$0xff] %v1797_v55  ;;  %v1801_v57 = vld [vmem:[#allocation13 + $0x1a0] sm:$0xff] }
 0x158   :  { %312 = vmatmul.mubr.f32.vlgmr.msra.gmra.mrb[0].mxu1 %v212_v56  ;;  %v1799_v56 = vld [vmem:[#allocation13 + $0x198] sm:$0xff]  ;;  %2205 = vst [vmem:[#allocation60_spill] sm:$0xff] %v1801_v57 }
 0x159   :  { %v1823_v57 = vld [vmem:[#allocation13 + $0x1f8] sm:$0xff] }
 0x22b   :  { %v313_v59 = vpop.f32.mrb[0].mxu1 }
 0x22c   :  { %v315_v60 = vpop.f32.mrb[1].mxu1  ;;  %957 = vmatpush3.msra.mxu0 %v313_v59  ;;  %v1805_v59 = vld [vmem:[#allocation13 + $0x1b0] sm:$0xff] }
 0x22d   :  { %961 = vmatprep.subr.mxu0 %v1527_v4  ;;  %959 = vmatmul.mubr.msk.f32.vlgmr.msra.gmra.mrb[2].mxu0 %vm320_vm2, %v319_v58  ;;  %v1803_v58 = vld [vmem:[#allocation13 + $0x1a8] sm:$0xff]  ;;  %2207 = vst [vmem:[#allocation62_spill] sm:$0xff] %v1805_v59  ;;  %v478_v59 = vld [vmem:[%s2159_s6] sm:$0x3] }
 0x22e   :  { %962 = vmatpush3.msra.mxu0 %v315_v60  ;;  %963 = vmatprep.mubr.msk.f32.mxu0 %vm1526_vm0, %v1527_v4  ;;  %v1693_v4 = vrot.slane %v556_v1, %v2164_v3  ;;  %2206 = vst [vmem:[#allocation61_spill] sm:$0xff] %v1803_v58  ;;  %v1807_v60 = vld [vmem:[#allocation13 + $0x1b8] sm:$0xff]  ;;  %v1813_v1 = vld [vmem:[#allocation13 + $0x1d0] sm:$0xff] }
 0x22f   :  { %2208 = vst [vmem:[#allocation63_spill] sm:$0xff] %v1807_v60  ;;  %2211 = vst [vmem:[#allocation66_spill] sm:$0xff] %v1813_v1  ;;  %v1815_v3 = vld [vmem:[#allocation13 + $0x1d8] sm:$0xff] }
 0x230   :  { %2169 = vst [vmem:[#allocation24_spill] sm:$0xff] %v1693_v4  ;;  %2212 = vst [vmem:[#allocation67_spill] sm:$0xff] %v1815_v3  ;;  %v1819_v4 = vld [vmem:[#allocation13 + $0x1e8] sm:$0xff]  ;;  %v2217_v3 = vsub.s32 1, %v1678_v63 }
 0x231   :  { %964 = vmatmul.mubr.msk.f32.vlgmr.msra.gmra.mrb[4].mxu0 %vm320_vm2, %v397_v61  ;;  %v1809_v61 = vld [vmem:[#allocation13 + $0x1c0] sm:$0xff]  ;;  %2214 = vst [vmem:[#allocation69_spill] sm:$0xff] %v1819_v4 }
 0x232   :  { %2209 = vst [vmem:[#allocation64_spill] sm:$0xff] %v1809_v61  ;;  %v2216_v61 = vsub.s32 0, %v1678_v63  ;;  %v487_v55 = vrot.slane %v478_v59, %v2217_v3 }
 0x234   :  { %v483_v60 = vrot.slane %v478_v59, %v2216_v61 }
 0x300   :  { %v390_v62 = vpop.f32.mrb[2].mxu0 }
 0x301   :  { %v490_v58 = vadd.f32 %v483_v60, %v390_v62   ;;  %v960_v1 = vpop.f32.mrb[3].mxu0 }
 0x304   :  { %v467_v0 = vpop.f32.mrb[4].mxu0 }
 0x305   :  { %v491_v53 = vadd.f32 %v487_v55, %v467_v0   ;;  %v965_v4 = vpop.f32.mrb[5].mxu0 }
 0x306 LB: > { %v2218_v6 = vld [vmem:[#allocation26_spill] sm:$0xff]  ;;  %v2219_v8 = vld [vmem:[#allocation28_spill] sm:$0xff]  ;;  %v2220_v5 = vld [vmem:[#allocation25_spill] sm:$0xff]  ;;  %650 = vmatprep.mubr.f32.mxu0 %v1504_v53  ;;  %s583_s11 = sadd.s32 1, %s1512_s11   ;;  %s1512_s11 = sphi %s1836_s11, %s583_s11   ;;  %v1508_v58 = vphi %v490_v58, %v2267_v58   ;;  %v1504_v53 = vphi %v491_v53, %v2266_v53  }
 0x307   : > { %v1849_v63 = vpack.c.bf16 %v2219_v8, %v2218_v6  ;;  %v2221_v7 = vld [vmem:[#allocation27_spill] sm:$0xff]  ;;  %v2222_v10 = vld [vmem:[#allocation30_spill] sm:$0xff]  ;;  %v2223_v12 = vld [vmem:[#allocation32_spill] sm:$0xff]  ;;  %p580_p11 = scmp.ge.s32.totalorder %s583_s11, 64  }
 0x308   : > { %v1853_v0 = vpack.c.bf16 %v2221_v7, %v2220_v5  ;;  %v1857_v3 = vpack.c.bf16 %v2223_v12, %v2222_v10  ;;  %v2224_v9 = vld [vmem:[#allocation29_spill] sm:$0xff]  ;;  %v2225_v11 = vld [vmem:[#allocation31_spill] sm:$0xff]  ;;  %v2226_v14 = vld [vmem:[#allocation34_spill] sm:$0xff]  ;;  %s1528_s6 = smov (%p580_p11), [#allocation16]  }
 0x309   : > { %1002 = vmatprep.subr.bf16.mxu0 %v1849_v63  ;;  %v1863_v4 = vpack.c.bf16 %v2225_v11, %v2224_v9  ;;  %v2227_v16 = vld [vmem:[#allocation36_spill] sm:$0xff]  ;;  %1066 = vmatprep.subr.bf16.mxu1 %v1849_v63  ;;  %v2228_v13 = vld [vmem:[#allocation33_spill] sm:$0xff]  ;;  %v2229_v15 = vld [vmem:[#allocation35_spill] sm:$0xff]  ;;  %v1942_v11 = vpack.c.bf16 %v1767_v40, %v1763_v38  ;;  %s913_s12 = sshll.u32 (%p580_p11), %s1528_s6, 4  ;;  %s914_s12 = int_to_ptr.vmem [resolvable:$true] %s913_s12 }
 0x30a   : > { %1004 = vmatpush1.bf16.msra.mxu0 %v1853_v0  ;;  %v1868_v55 = vpack.c.bf16 %v2227_v16, %v2226_v14  ;;  %1068 = vmatpush1.bf16.msra.mxu1 %v1853_v0  ;;  %v1875_v59 = vpack.c.bf16 %v2229_v15, %v2228_v13  ;;  %v2230_v18 = vld [vmem:[#allocation38_spill] sm:$0xff]  ;;  %v2231_v20 = vld [vmem:[#allocation40_spill] sm:$0xff]  ;;  %v2232_v17 = vld [vmem:[#allocation37_spill] sm:$0xff]  ;;  %v1954_v13 = vpack.c.bf16 %v1775_v44, %v1771_v42  ;;  %s1456_s13 = scalar_lea.vmem (%p580_p11), %s914_s12, 256  ;;  %p1461_p13 = scmp.lt.s32.totalorder (%p580_p11), %s914_s12, %s914_s12 }
 0x30b   : > { %1006 = vmatprep.subr.bf16.mxu0 %v1857_v3  ;;  %v1880_v60 = vpack.c.bf16 %v2231_v20, %v2230_v18  ;;  %1070 = vmatprep.subr.bf16.mxu1 %v1857_v3  ;;  %v2233_v19 = vld [vmem:[#allocation39_spill] sm:$0xff]  ;;  %v2234_v22 = vld [vmem:[#allocation42_spill] sm:$0xff]  ;;  %v2235_v24 = vld [vmem:[#allocation44_spill] sm:$0xff]  ;;  %v1960_v14 = vpack.c.bf16 %v1773_v43, %v1769_v41  ;;  %v1966_v15 = vpack.c.bf16 %v1783_v48, %v1779_v46  ;;  %p1457_p12 = scmp.ne.s32.totalorder (%p580_p11), %s914_s12, %s1456_s13  ;;  %p1462_p0 = scmp.lt.s32.totalorder (%p580_p11), %s1456_s13, %s1456_s13 }
 0x30c   : > { %v1888_v61 = vpack.c.bf16 %v2233_v19, %v2232_v17  ;;  %v1894_v62 = vpack.c.bf16 %v2235_v24, %v2234_v22  ;;  %v2236_v21 = vld [vmem:[#allocation41_spill] sm:$0xff]  ;;  %v2237_v23 = vld [vmem:[#allocation43_spill] sm:$0xff]  ;;  %v2238_v26 = vld [vmem:[#allocation46_spill] sm:$0xff]  ;;  %v1972_v16 = vpack.c.bf16 %v1781_v47, %v1777_v45  ;;  %v1978_v17 = vpack.c.bf16 %v1791_v52, %v1787_v50 }
 0x30d   : > { %v1900_v1 = vpack.c.bf16 %v2237_v23, %v2236_v21  ;;  %v2239_v28 = vld [vmem:[#allocation48_spill] sm:$0xff]  ;;  %v2240_v25 = vld [vmem:[#allocation45_spill] sm:$0xff]  ;;  %v2241_v27 = vld [vmem:[#allocation47_spill] sm:$0xff]  ;;  %v1984_v18 = vpack.c.bf16 %v1789_v51, %v1785_v49  ;;  %v1990_v19 = vpack.c.bf16 %v1799_v56, %v1795_v54  ;;  %p1463_p1 = por (%p580_p11), %p1462_p0, %p1461_p13 }
 0x30e   : > { %1008 = vmatpush1.bf16.msra.mxu0 %v1863_v4  ;;  %1072 = vmatpush1.bf16.msra.mxu1 %v1863_v4  ;;  %v1906_v5 = vpack.c.bf16 %v2239_v28, %v2238_v26  ;;  %v1912_v6 = vpack.c.bf16 %v2241_v27, %v2240_v25  ;;  %v2242_v30 = vld [vmem:[#allocation50_spill] sm:$0xff]  ;;  %v2243_v32 = vld [vmem:[#allocation52_spill] sm:$0xff]  ;;  %v2244_v29 = vld [vmem:[#allocation49_spill] sm:$0xff] }
 0x30f   : > { %1010 = vmatprep.subr.bf16.mxu0 %v1868_v55  ;;  %1074 = vmatprep.subr.bf16.mxu1 %v1868_v55  ;;  %v1918_v7 = vpack.c.bf16 %v2243_v32, %v2242_v30  ;;  %v2245_v31 = vld [vmem:[#allocation51_spill] sm:$0xff]  ;;  %v2246_v34 = vld [vmem:[#allocation54_spill] sm:$0xff]  ;;  %v2247_v36 = vld [vmem:[#allocation56_spill] sm:$0xff]  ;;  %p1464_p2 = pnand (%p580_p11), %p1463_p1, %p1457_p12 }
 0x310   : > { %v1924_v8 = vpack.c.bf16 %v2245_v31, %v2244_v29  ;;  %v1930_v9 = vpack.c.bf16 %v2247_v36, %v2246_v34  ;;  %v2248_v33 = vld [vmem:[#allocation53_spill] sm:$0xff]  ;;  %v2249_v35 = vld [vmem:[#allocation55_spill] sm:$0xff]  ;;  %v2251_v20 = vld [vmem:[#allocation58_spill] sm:$0xff]  ;;  %v659_v31 = vstv %s574_s8 }
 0x311   : > { %v1936_v10 = vpack.c.bf16 %v2249_v35, %v2248_v33  ;;  %v2250_v37 = vld [vmem:[#allocation57_spill] sm:$0xff]  ;;  %v2252_v21 = vld [vmem:[#allocation59_spill] sm:$0xff]  ;;  %v2255_v26 = vld [vmem:[#allocation60_spill] sm:$0xff] }
 0x312   : > { %1012 = vmatpush1.bf16.msra.mxu0 %v1875_v59  ;;  %1076 = vmatpush1.bf16.msra.mxu1 %v1875_v59  ;;  %v1948_v12 = vpack.c.bf16 %v1765_v39, %v2250_v37  ;;  %v1996_v22 = vpack.c.bf16 %v2252_v21, %v2251_v20  ;;  %v2253_v23 = vld [vmem:[#allocation61_spill] sm:$0xff]  ;;  %v2254_v24 = vld [vmem:[#allocation63_spill] sm:$0xff]  ;;  %v2256_v27 = vld [vmem:[#allocation62_spill] sm:$0xff] }
 0x313   : > { %1014 = vmatprep.subr.bf16.mxu0 %v1880_v60  ;;  %1078 = vmatprep.subr.bf16.mxu1 %v1880_v60  ;;  %v2002_v25 = vpack.c.bf16 %v2254_v24, %v2253_v23  ;;  %v2008_v28 = vpack.c.bf16 %v2256_v27, %v2255_v26  ;;  %v2257_v20 = vld [vmem:[#allocation65_spill] sm:$0xff]  ;;  %v2258_v21 = vld [vmem:[#allocation67_spill] sm:$0xff]  ;;  %v2259_v23 = vld [vmem:[#allocation64_spill] sm:$0xff] }
 0x314   : > { %v2014_v29 = vpack.c.bf16 %v2258_v21, %v2257_v20  ;;  %v2260_v24 = vld [vmem:[#allocation66_spill] sm:$0xff]  ;;  %v2261_v26 = vld [vmem:[#allocation69_spill] sm:$0xff]  ;;  %v2262_v20 = vld [vmem:[#allocation68_spill] sm:$0xff] }
 0x315   : > { %v2020_v30 = vpack.c.bf16 %v2260_v24, %v2259_v23  ;;  %v2026_v27 = vpack.c.bf16 %v1823_v57, %v2261_v26  ;;  %v2263_v2 = vld [vmem:[#allocation70_spill] sm:$0xff]  ;;  %v2264_v23 = vld [vmem:[#allocation23_spill] sm:$0xff] }
 0x316   : > { %1016 = vmatpush1.bf16.msra.mxu0 %v1888_v61  ;;  %1080 = vmatpush1.bf16.msra.mxu1 %v1888_v61  ;;  %v2032_v21 = vpack.c.bf16 %v2263_v2, %v2262_v20  ;;  %v2265_v20 = vld [vmem:[#allocation24_spill] sm:$0xff] }
 0x317   : > { %1018 = vmatprep.subr.bf16.mxu0 %v1894_v62  ;;  %1082 = vmatprep.subr.bf16.mxu1 %v1894_v62 }
 0x31a   : > { %1020 = vmatpush1.bf16.msra.mxu0 %v1900_v1  ;;  %1084 = vmatpush1.bf16.msra.mxu1 %v1900_v1 }
 0x31b   : > { %1022 = vmatprep.subr.bf16.mxu0 %v1906_v5  ;;  %1086 = vmatprep.subr.bf16.mxu1 %v1906_v5 }
 0x31e   : > { %1024 = vmatpush1.bf16.msra.mxu0 %v1912_v6  ;;  %1088 = vmatpush1.bf16.msra.mxu1 %v1912_v6 }
 0x31f   : > { %1026 = vmatprep.subr.bf16.mxu0 %v1918_v7  ;;  %1090 = vmatprep.subr.bf16.mxu1 %v1918_v7 }
 0x322   : > { %1028 = vmatpush1.bf16.msra.mxu0 %v1924_v8  ;;  %1092 = vmatpush1.bf16.msra.mxu1 %v1924_v8 }
 0x323   : > { %1030 = vmatprep.subr.bf16.mxu0 %v1930_v9  ;;  %1094 = vmatprep.subr.bf16.mxu1 %v1930_v9 }
 0x326   : > { %1032 = vmatpush1.bf16.msra.mxu0 %v1936_v10  ;;  %1096 = vmatpush1.bf16.msra.mxu1 %v1936_v10 }
 0x327   : > { %1034 = vmatprep.subr.bf16.mxu0 %v1942_v11  ;;  %1098 = vmatprep.subr.bf16.mxu1 %v1942_v11 }
 0x32a   : > { %1036 = vmatpush1.bf16.msra.mxu0 %v1948_v12  ;;  %1100 = vmatpush1.bf16.msra.mxu1 %v1948_v12 }
 0x32b   : > { %1038 = vmatprep.subr.bf16.mxu0 %v1954_v13  ;;  %1102 = vmatprep.subr.bf16.mxu1 %v1954_v13 }
 0x32e   : > { %1040 = vmatpush1.bf16.msra.mxu0 %v1960_v14  ;;  %1104 = vmatpush1.bf16.msra.mxu1 %v1960_v14 }
 0x32f   : > { %1042 = vmatprep.subr.bf16.mxu0 %v1966_v15  ;;  %1106 = vmatprep.subr.bf16.mxu1 %v1966_v15 }
 0x332   : > { %1044 = vmatpush1.bf16.msra.mxu0 %v1972_v16  ;;  %1108 = vmatpush1.bf16.msra.mxu1 %v1972_v16 }
 0x333   : > { %1046 = vmatprep.subr.bf16.mxu0 %v1978_v17  ;;  %1110 = vmatprep.subr.bf16.mxu1 %v1978_v17 }
 0x336   : > { %1048 = vmatpush1.bf16.msra.mxu0 %v1984_v18  ;;  %1112 = vmatpush1.bf16.msra.mxu1 %v1984_v18 }
 0x337   : > { %1050 = vmatprep.subr.bf16.mxu0 %v1990_v19  ;;  %1114 = vmatprep.subr.bf16.mxu1 %v1990_v19 }
 0x33a   : > { %1052 = vmatpush1.bf16.msra.mxu0 %v1996_v22  ;;  %1116 = vmatpush1.bf16.msra.mxu1 %v1996_v22 }
 0x33b   : > { %1054 = vmatprep.subr.bf16.mxu0 %v2002_v25  ;;  %1118 = vmatprep.subr.bf16.mxu1 %v2002_v25 }
 0x33e   : > { %1056 = vmatpush1.bf16.msra.mxu0 %v2008_v28  ;;  %1120 = vmatpush1.bf16.msra.mxu1 %v2008_v28 }
 0x33f   : > { %1058 = vmatprep.subr.bf16.mxu0 %v2014_v29  ;;  %1122 = vmatprep.subr.bf16.mxu1 %v2014_v29 }
 0x342   : > { %1060 = vmatpush1.bf16.msra.mxu0 %v2020_v30  ;;  %1124 = vmatpush1.bf16.msra.mxu1 %v2020_v30 }
 0x343   : > { %1062 = vmatprep.subr.bf16.mxu0 %v2026_v27  ;;  %1126 = vmatprep.subr.bf16.mxu1 %v2026_v27 }
 0x346   : > { %1064 = vmatpush1.bf16.msra.mxu0 %v2032_v21  ;;  %1128 = vmatpush1.bf16.msra.mxu1 %v2032_v21 }
 0x347   : > { %1130 = vmatprep.subr.bf16.mxu0 %v1849_v63  ;;  %1194 = vmatprep.subr.bf16.mxu1 %v1849_v63 }
 0x349   : > { %651 = vmatmul.mubr.f32.vlgmr.msra.gmra.mrb[0].mxu0 %v1508_v58 }
 0x34a   : > { %1132 = vmatpush1.bf16.msra.mxu0 %v1853_v0 }
 0x34b   : > { %1134 = vmatprep.subr.bf16.mxu0 %v1857_v3 }
 0x34e   : > { %1136 = vmatpush1.bf16.msra.mxu0 %v1863_v4 }
 0x34f   : > { %1138 = vmatprep.subr.bf16.mxu0 %v1868_v55 }
 0x352   : > { %1140 = vmatpush1.bf16.msra.mxu0 %v1875_v59 }
 0x353   : > { %1142 = vmatprep.subr.bf16.mxu0 %v1880_v60 }
 0x356   : > { %1144 = vmatpush1.bf16.msra.mxu0 %v1888_v61 }
 0x357   : > { %1146 = vmatprep.subr.bf16.mxu0 %v1894_v62 }
 0x35a   : > { %1148 = vmatpush1.bf16.msra.mxu0 %v1900_v1 }
 0x35b   : > { %1150 = vmatprep.subr.bf16.mxu0 %v1906_v5 }
 0x35e   : > { %1152 = vmatpush1.bf16.msra.mxu0 %v1912_v6 }
 0x35f   : > { %1154 = vmatprep.subr.bf16.mxu0 %v1918_v7 }
 0x362   : > { %1156 = vmatpush1.bf16.msra.mxu0 %v1924_v8 }
 0x363   : > { %1158 = vmatprep.subr.bf16.mxu0 %v1930_v9 }
 0x366   : > { %1160 = vmatpush1.bf16.msra.mxu0 %v1936_v10 }
 0x367   : > { %1162 = vmatprep.subr.bf16.mxu0 %v1942_v11 }
 0x36a   : > { %1164 = vmatpush1.bf16.msra.mxu0 %v1948_v12 }
 0x36b   : > { %1166 = vmatprep.subr.bf16.mxu0 %v1954_v13 }
 0x36e   : > { %1168 = vmatpush1.bf16.msra.mxu0 %v1960_v14 }
 0x36f   : > { %1170 = vmatprep.subr.bf16.mxu0 %v1966_v15 }
 0x372   : > { %1172 = vmatpush1.bf16.msra.mxu0 %v1972_v16 }
 0x373   : > { %1174 = vmatprep.subr.bf16.mxu0 %v1978_v17 }
 0x376   : > { %1176 = vmatpush1.bf16.msra.mxu0 %v1984_v18 }
 0x377   : > { %1178 = vmatprep.subr.bf16.mxu0 %v1990_v19 }
 0x37a   : > { %1180 = vmatpush1.bf16.msra.mxu0 %v1996_v22 }
 0x37b   : > { %1182 = vmatprep.subr.bf16.mxu0 %v2002_v25 }
 0x37e   : > { %1184 = vmatpush1.bf16.msra.mxu0 %v2008_v28 }
 0x37f   : > { %1186 = vmatprep.subr.bf16.mxu0 %v2014_v29 }
 0x382   : > { %1188 = vmatpush1.bf16.msra.mxu0 %v2020_v30 }
 0x383   : > { %1190 = vmatprep.subr.bf16.mxu0 %v2026_v27 }
 0x386   : > { %1192 = vmatpush1.bf16.msra.mxu0 %v2032_v21 }
 0x41c   : > { %v652_v63 = vpop.f32.mrb[0].mxu0 }
 0x41d   : > { %v653_v24 = vadd.f32 %v652_v63, %v2264_v23  ;;  %v654_v26 = vpop.f32.mrb[1].mxu0 }
 0x41e   : > { %v655_v2 = vadd.f32 %v654_v26, %v2265_v20 }
 0x41f   : > { %1296 = vtanh.f32 %v653_v24 }
 0x420   : > { %1298 = vtanh.f32 %v655_v2 }
 0x429   : > { %v2078_v32 = vpop.eup %1296 }
 0x42a   : > { %v2080_v33 = vpop.eup %1298  ;;  %v660_v34 = vmul.f32 %v2078_v32, %v659_v31 }
 0x42b   : > { %v661_v35 = vmul.f32 %v2080_v33, %v659_v31 }
 0x42c   : > { %v662_v37 = vadd.f32 %v1508_v58, %v660_v34 }
 0x42d   : > { %v663_v36 = vadd.f32 %v1504_v53, %v661_v35 }
 0x42f   : > { %728 = vmatprep.mubr.f32.mxu1 %v663_v36 }
 0x430   : > { %729 = vmatmul.mubr.f32.vlgmr.msra.gmra.mrb[0].mxu1 %v662_v37 }
 0x431   : > { %1196 = vmatpush1.bf16.msra.mxu1 %v1853_v0 }
 0x432   : > { %1198 = vmatprep.subr.bf16.mxu1 %v1857_v3 }
 0x435   : > { %1200 = vmatpush1.bf16.msra.mxu1 %v1863_v4 }
 0x436   : > { %1202 = vmatprep.subr.bf16.mxu1 %v1868_v55 }
 0x439   : > { %1204 = vmatpush1.bf16.msra.mxu1 %v1875_v59 }
 0x43a   : > { %1206 = vmatprep.subr.bf16.mxu1 %v1880_v60  ;;  %v900_v60 = vstv %s577_s22 }
 0x43d   : > { %1208 = vmatpush1.bf16.msra.mxu1 %v1888_v61 }
 0x43e   : > { %1210 = vmatprep.subr.bf16.mxu1 %v1894_v62 }
 0x441   : > { %1212 = vmatpush1.bf16.msra.mxu1 %v1900_v1 }
 0x442   : > { %1214 = vmatprep.subr.bf16.mxu1 %v1906_v5 }
 0x445   : > { %1216 = vmatpush1.bf16.msra.mxu1 %v1912_v6 }
 0x446   : > { %1218 = vmatprep.subr.bf16.mxu1 %v1918_v7 }
 0x449   : > { %1220 = vmatpush1.bf16.msra.mxu1 %v1924_v8 }
 0x44a   : > { %1222 = vmatprep.subr.bf16.mxu1 %v1930_v9 }
 0x44d   : > { %1224 = vmatpush1.bf16.msra.mxu1 %v1936_v10 }
 0x44e   : > { %1226 = vmatprep.subr.bf16.mxu1 %v1942_v11 }
 0x451   : > { %1228 = vmatpush1.bf16.msra.mxu1 %v1948_v12 }
 0x452   : > { %1230 = vmatprep.subr.bf16.mxu1 %v1954_v13 }
 0x455   : > { %1232 = vmatpush1.bf16.msra.mxu1 %v1960_v14 }
 0x456   : > { %1234 = vmatprep.subr.bf16.mxu1 %v1966_v15 }
 0x459   : > { %1236 = vmatpush1.bf16.msra.mxu1 %v1972_v16 }
 0x45a   : > { %1238 = vmatprep.subr.bf16.mxu1 %v1978_v17 }
 0x45d   : > { %1240 = vmatpush1.bf16.msra.mxu1 %v1984_v18  ;;  %v814_v18 = vstv %s1689_s2 }
 0x45e   : > { %1242 = vmatprep.subr.bf16.mxu1 %v1990_v19 }
 0x461   : > { %1244 = vmatpush1.bf16.msra.mxu1 %v1996_v22 }
 0x462   : > { %1246 = vmatprep.subr.bf16.mxu1 %v2002_v25 }
 0x465   : > { %1248 = vmatpush1.bf16.msra.mxu1 %v2008_v28 }
 0x466   : > { %1250 = vmatprep.subr.bf16.mxu1 %v2014_v29 }
 0x469   : > { %1252 = vmatpush1.bf16.msra.mxu1 %v2020_v30 }
 0x46a   : > { %1254 = vmatprep.subr.bf16.mxu1 %v2026_v27 }
 0x46d   : > { %1256 = vmatpush1.bf16.msra.mxu1 %v2032_v21 }
 0x503   : > { %v730_v2 = vpop.f32.mrb[0].mxu1 }
 0x504   : > { %v731_v5 = vadd.f32 %v730_v2, %v2264_v23  ;;  %v732_v6 = vpop.f32.mrb[1].mxu1 }
 0x505   : > { %v733_v7 = vadd.f32 %v732_v6, %v2265_v20 }
 0x506   : > { %1300 = vtanh.f32 %v731_v5 }
 0x507   : > { %1302 = vtanh.f32 %v733_v7 }
 0x510   : > { %v1301_v8 = vpop.eup %1300 }
 0x511   : > { %v1303_v9 = vpop.eup %1302  ;;  %v737_v10 = vmul.f32 %v1301_v8, %v659_v31 }
 0x512   : > { %v738_v11 = vmul.f32 %v1303_v9, %v659_v31 }
 0x513   : > { %v739_v13 = vadd.f32 %v1508_v58, %v737_v10 }
 0x514   : > { %v740_v12 = vadd.f32 %v1504_v53, %v738_v11 }
 0x516   : > { %805 = vmatprep.mubr.f32.mxu0 %v740_v12 }
 0x517   : > { %806 = vmatmul.mubr.f32.vlgmr.msra.gmra.mrb[2].mxu0 %v739_v13 }
 0x5ea   : > { %v807_v14 = vpop.f32.mrb[2].mxu0 }
 0x5eb   : > { %v808_v15 = vadd.f32 %v807_v14, %v2264_v23  ;;  %v809_v16 = vpop.f32.mrb[3].mxu0 }
 0x5ec   : > { %v810_v17 = vadd.f32 %v809_v16, %v2265_v20 }
 0x5ed   : > { %1304 = vtanh.f32 %v808_v15 }
 0x5ee   : > { %1306 = vtanh.f32 %v810_v17 }
 0x5f7   : > { %v1305_v19 = vpop.eup %1304 }
 0x5f8   : > { %v1307_v22 = vpop.eup %1306  ;;  %v815_v25 = vmul.f32 %v1305_v19, %v814_v18  ;;  %v892_v37 = vadd.f32 %v1305_v19, %v1301_v8 }
 0x5f9   : > { %v816_v28 = vmul.f32 %v1307_v22, %v814_v18  ;;  %v893_v0 = vadd.f32 %v1307_v22, %v1303_v9 }
 0x5fa   : > { %v817_v30 = vadd.f32 %v1508_v58, %v815_v25  ;;  %v894_v3 = vmul.f32 2.0, %v892_v37 }
 0x5fb   : > { %v818_v29 = vadd.f32 %v1504_v53, %v816_v28  ;;  %v895_v4 = vmul.f32 2.0, %v893_v0 }
 0x5fc   : > { %v896_v55 = vadd.f32 %v2078_v32, %v894_v3 }
 0x5fd   : > { %883 = vmatprep.mubr.f32.mxu1 %v818_v29  ;;  %v897_v61 = vadd.f32 %v2080_v33, %v895_v4 }
 0x5fe   : > { %884 = vmatmul.mubr.f32.vlgmr.msra.gmra.mrb[2].mxu1 %v817_v30 }
 0x6d1   : > { %v885_v31 = vpop.f32.mrb[2].mxu1 }
 0x6d2   : > { %v886_v34 = vadd.f32 %v885_v31, %v2264_v23  ;;  %v887_v35 = vpop.f32.mrb[3].mxu1 }
 0x6d3   : > { %v888_v36 = vadd.f32 %v887_v35, %v2265_v20 }
 0x6d4   : > { %1308 = vtanh.f32 %v886_v34 }
 0x6d5   : > { %1310 = vtanh.f32 %v888_v36 }
 0x6de   : > { %v1309_v59 = vpop.eup %1308 }
 0x6df   : > { %v1311_v62 = vpop.eup %1310  ;;  %v898_v1 = vadd.f32 %v1309_v59, %v896_v55 }
 0x6e0   : > { %v899_v27 = vadd.f32 %v1311_v62, %v897_v61  ;;  %582 = sbr.rel (!%p580_p11) target bundleno = 774 (0x306), region = 103 }
 0x6e1   : > { %v901_v21 = vmul.f32 %v900_v60, %v898_v1 }
 0x6e2   : > { %v902_v63 = vmul.f32 %v900_v60, %v899_v27 }
 0x6e3   : > { %v903_v24 = vadd.f32 %v1508_v58, %v901_v21  }
 0x6e4   : > { %v904_v26 = vadd.f32 %v1504_v53, %v902_v63  }
 0x6e5   : > { %v2267_v58 = vmov %v903_v24  ;;  %905 = vst [vmem:[#allocation16] sm:$0xff] (%p580_p11), %v903_v24 }
 0x6e6   : > { %v2266_v53 = vmov %v904_v26  ;;  %906 = vst [vmem:[#allocation16 + $0x8] sm:$0xff] (%p580_p11), %v904_v26 }
 0x6e7   :  { %1467 = shalt.err (!%p1464_p2)
}
 0x6e8   :  { %s1468_s14 = scalar_lea.hbm %s2163_s10, 256 }
 0x6e9   :  { %p1469_p3 = scmp.ne.s32.totalorder %s2163_s10, %s1468_s14  ;;  %p1472_p4 = scmp.lt.u32.totalorder %s1468_s14, %s2163_s10 }
 0x6eb   :  { %p1474_p5 = pnand %p1472_p4, %p1469_p3 }
 0x6ed   :  { %1477 = shalt.err (!%p1474_p5)
}
 0x6ee   :  { %916 = dma.vmem_to_hbm [thread:$0]  %s914_s12, 256, %s2163_s10, [#allocation5]  }
 0x6ef   :  { %1500 = dma.done.wait [#allocation5], 256  }
 0x6f0   :  { %1501 = vsyncadd [#allocation5], 4294967040 }
 0x6f1   :  { %920 = vsyncpa [#allocation4], 1 }
 0x6f2   :  { %921 = vsyncpa [#allocation8], 1 }
 0x6f3   :  { %922 = vsyncpa [#allocation11], 1 }
 0x6f4   :  { %923 = vsyncpa [#allocation14], 1 }
 0x6f5   :  { %924 = vsyncpa [#allocation5], 1 }
 0x6f6   :  { %925 = vsyncpa [#allocation6], 1 }

</bundles_post_ra>
